<compile_context>
chip_gen: v7x
topology: tpu7x:2x2x1
jax: 0.10.0
libtpu: 0.0.40
codegen_flags: <defaults>
</compile_context>

<pallas_src>
import functools

import jax
import jax.numpy as jnp
from jax.experimental import pallas as pl
from jax.experimental.pallas import tpu as pltpu

SMALL = 1e-08

# synthetic stand-ins for the `constant` module of the original repo
N_BIO = 4      # len(constant.BIO_TO_ID)
N_LABEL = 6    # len(constant.LABEL_TO_ID)
PAD_ID = 0     # constant.PAD_ID

_LANE = 128


def _round_up(n, m):
    return ((n + m - 1) // m) * m


def _vmem_capacity_bytes():
    try:
        return int(pltpu.get_tpu_info().vmem_capacity_bytes)
    except Exception:
        return 64 * 1024 * 1024


_VMEM_CAP = _vmem_capacity_bytes()
# ~96 MiB on v5e/v6e (128 MiB physical), ~36 MiB on v7x (64 MiB physical per TC).
_VMEM_LIMIT = 96 * 1024 * 1024 if _VMEM_CAP >= 100 * 1024 * 1024 else 36 * 1024 * 1024


def _row_tile(m):
    """Row tile for M-tiled kernels; always tiles large M (padded last block)."""
    big = 512 if _VMEM_CAP >= 100 * 1024 * 1024 else 256
    if m >= big:
        return big
    return _round_up(max(m, 8), 8)


def _pair_row_tile(S, Ho, Lp):
    """i-axis tile for the pairwise kernel; bounds (ti*S)-row intermediates by VMEM."""
    ti = S
    budget = _VMEM_LIMIT // 6
    while ti > 8 and ti % 2 == 0 and ti * S * (Ho + 3 * Lp) * 4 > budget:
        ti //= 2
    return ti


def _kl_col_tile(n):
    cap = 16384 if _VMEM_CAP >= 100 * 1024 * 1024 else 4096
    if n <= cap:
        return n
    for t in range(cap, 127, -128):
        if n % t == 0:
            return t
    return n


# ----------------------------------------------------------------------------
# Generic linear:  y = act(x @ w + b)   (lane-padded output, in-kernel bf16 cast)
# ----------------------------------------------------------------------------
def _linear_kernel(x_ref, w_ref, b_ref, o_ref, *, act):
    x = x_ref[...].astype(jnp.bfloat16)
    y = jnp.dot(x, w_ref[...], preferred_element_type=jnp.float32) + b_ref[...]
    if act == "relu":
        y = jnp.maximum(y, 0.0)
    elif act == "tanh":
        y = jnp.tanh(y)
    elif act == "sigmoid":
        y = jax.nn.sigmoid(y)
    o_ref[...] = y


def linear_pallas(x, w, b, act="none"):
    """act(x @ w + b); x:(M,K) f32, w:(K,N), b:(N,) -> (M,N) f32."""
    M, K = x.shape
    N = w.shape[1]
    Np = _round_up(N, _LANE)
    if Np != N:
        w = jnp.pad(w, ((0, 0), (0, Np - N)))
        b = jnp.pad(b, (0, Np - N))
    tm = _row_tile(M)
    Mp = _round_up(M, tm)
    if Mp != M:
        x = jnp.pad(x, ((0, Mp - M), (0, 0)))
    y = pl.pallas_call(
        functools.partial(_linear_kernel, act=act),
        out_shape=jax.ShapeDtypeStruct((Mp, Np), jnp.float32),
        grid=(Mp // tm,),
        in_specs=[pl.BlockSpec((tm, K), lambda i: (i, 0)),
                  pl.BlockSpec((K, Np), lambda i: (0, 0)),
                  pl.BlockSpec((1, Np), lambda i: (0, 0))],
        out_specs=pl.BlockSpec((tm, Np), lambda i: (i, 0)),
        compiler_params=pltpu.CompilerParams(
            dimension_semantics=("parallel",),
            vmem_limit_bytes=_VMEM_LIMIT),
    )(x, w.astype(jnp.bfloat16), b.reshape(1, Np).astype(jnp.float32))
    if Mp != M:
        y = y[:M]
    return y if Np == N else y[:, :N]


# ----------------------------------------------------------------------------
# Pairwise relation kernel:
#   prob(i,j) = sigmoid(Cr(relu(Lr(cat(h_i, h_j)))))  for all (i, j)
# mask / max-over-j fused in-kernel (mask built from scalar-prefetched real_len),
# optional Cg head (possibly on a different H).  grid = (BB, S//ti), both "parallel".
# ----------------------------------------------------------------------------
def _pairwise_kernel(rlen_ref, h_i_ref, h_all_ref, *refs,
                     with_cg, cg_separate, with_max, S, ti):
    idx = 0
    if cg_separate:
        hg_ref = refs[idx]; idx += 1
    w1_ref, w2_ref, bl_ref, wc_ref, bc_ref = refs[idx:idx + 5]; idx += 5
    if with_cg:
        wg_ref, bg_ref = refs[idx:idx + 2]; idx += 2
    pr_ref = refs[idx]; idx += 1
    if with_max:
        prmax_ref = refs[idx]; idx += 1
    if with_cg:
        cg_ref = refs[idx]; idx += 1

    b = pl.program_id(0)
    it = pl.program_id(1)
    rl = rlen_ref[b]

    h_i = h_i_ref[0].astype(jnp.bfloat16)                     # (ti, H2)
    h_all = h_all_ref[0].astype(jnp.bfloat16)                 # (S, H2)
    a = jnp.dot(h_i, w1_ref[...], preferred_element_type=jnp.float32) + bl_ref[...]   # (ti,Ho)
    bm = jnp.dot(h_all, w2_ref[...], preferred_element_type=jnp.float32)              # (S,Ho)
    Ho = a.shape[1]
    # VPU broadcast-add (no selection matmuls): pre[i,j] = relu(a[i] + bm[j])
    pre = jnp.maximum(a[:, None, :] + bm[None, :, :], 0.0).reshape(ti * S, Ho)
    logits = jnp.dot(pre.astype(jnp.bfloat16), wc_ref[...],
                     preferred_element_type=jnp.float32) + bc_ref[...]                # (ti*S,Lp)
    Lp = logits.shape[1]
    prob = jax.nn.sigmoid(logits).reshape(ti, S, Lp)

    # mask_RC(i,j) = (i < real_len) & (j < real_len)  (contiguous valid prefix)
    gi = jax.lax.broadcasted_iota(jnp.int32, (ti, S, 1), 0) + it * ti
    gj = jax.lax.broadcasted_iota(jnp.int32, (ti, S, 1), 1)
    valid = jnp.logical_and(gi < rl, gj < rl)
    masked = jnp.where(valid, prob, 0.0)                      # (ti, S, Lp)
    pr_ref[0] = masked.reshape(ti * S, Lp)
    if with_max:
        filled = jnp.where(valid, masked, -100000000000.0)
        prmax_ref[0] = jnp.max(filled, axis=1)                # (ti, Lp)  (per-lane max)
    if with_cg:
        hg = hg_ref[0].astype(jnp.bfloat16) if cg_separate else h_i
        cg_ref[0] = jnp.dot(hg, wg_ref[...],
                            preferred_element_type=jnp.float32) + bg_ref[...]


def pairwise_relation_pallas(h, real_len, w_l, b_l, w_c, b_c,
                             cg_w=None, cg_b=None, cg_h=None, with_max=False):
    """h: (BB, S, 2h) f32 -> masked sigmoid probs (BB, S, S, L)
       [+ max-over-j probs (BB, S, L)] [+ Cg logits (BB, S, G) computed on cg_h or h]."""
    BB, S, H2 = h.shape
    Hout = w_l.shape[1]
    L = w_c.shape[1]
    Lp = _round_up(L, _LANE)
    with_cg = cg_w is not None
    cg_separate = cg_h is not None

    w1 = w_l[:H2].astype(jnp.bfloat16)
    w2 = w_l[H2:].astype(jnp.bfloat16)
    wc = jnp.pad(w_c, ((0, 0), (0, Lp - L))).astype(jnp.bfloat16)
    bc = jnp.pad(b_c, (0, Lp - L)).reshape(1, Lp).astype(jnp.float32)
    bl = b_l.reshape(1, Hout).astype(jnp.float32)

    ti = _pair_row_tile(S, Hout, Lp)
    n_it = S // ti

    in_specs = [pl.BlockSpec((1, ti, H2), lambda b, it, rl: (b, it, 0)),   # h (i rows)
                pl.BlockSpec((1, S, H2), lambda b, it, rl: (b, 0, 0))]     # h (all j rows)
    inputs = [h, h]
    if cg_separate:
        in_specs.append(pl.BlockSpec((1, ti, H2), lambda b, it, rl: (b, it, 0)))
        inputs.append(cg_h)
    in_specs += [pl.BlockSpec((H2, Hout), lambda b, it, rl: (0, 0)),
                 pl.BlockSpec((H2, Hout), lambda b, it, rl: (0, 0)),
                 pl.BlockSpec((1, Hout), lambda b, it, rl: (0, 0)),
                 pl.BlockSpec((Hout, Lp), lambda b, it, rl: (0, 0)),
                 pl.BlockSpec((1, Lp), lambda b, it, rl: (0, 0))]
    inputs += [w1, w2, bl, wc, bc]

    out_shape = [jax.ShapeDtypeStruct((BB, S * S, Lp), jnp.float32)]
    out_specs = [pl.BlockSpec((1, ti * S, Lp), lambda b, it, rl: (b, it, 0))]
    if with_max:
        out_shape.append(jax.ShapeDtypeStruct((BB, S, Lp), jnp.float32))
        out_specs.append(pl.BlockSpec((1, ti, Lp), lambda b, it, rl: (b, it, 0)))
    if with_cg:
        G = cg_w.shape[1]
        Gp = _round_up(G, _LANE)
        wg = jnp.pad(cg_w, ((0, 0), (0, Gp - G))).astype(jnp.bfloat16)
        bg = jnp.pad(cg_b, (0, Gp - G)).reshape(1, Gp).astype(jnp.float32)
        in_specs += [pl.BlockSpec((H2, Gp), lambda b, it, rl: (0, 0)),
                     pl.BlockSpec((1, Gp), lambda b, it, rl: (0, 0))]
        inputs += [wg, bg]
        out_shape.append(jax.ShapeDtypeStruct((BB, S, Gp), jnp.float32))
        out_specs.append(pl.BlockSpec((1, ti, Gp), lambda b, it, rl: (b, it, 0)))

    outs = pl.pallas_call(
        functools.partial(_pairwise_kernel, with_cg=with_cg, cg_separate=cg_separate,
                          with_max=with_max, S=S, ti=ti),
        out_shape=tuple(out_shape),
        grid_spec=pltpu.PrefetchScalarGridSpec(
            num_scalar_prefetch=1,
            grid=(BB, n_it),
            in_specs=in_specs,
            out_specs=tuple(out_specs)),
        compiler_params=pltpu.CompilerParams(
            dimension_semantics=("parallel", "parallel"),
            vmem_limit_bytes=_VMEM_LIMIT),
    )(real_len.astype(jnp.int32), *inputs)

    results = [outs[0][:, :, :L].reshape(BB, S, S, L)]
    idx = 1
    if with_max:
        results.append(outs[idx][:, :, :L]); idx += 1
    if with_cg:
        results.append(outs[idx][:, :, :cg_w.shape[1]]); idx += 1
    return tuple(results) if len(results) > 1 else results[0]


# ----------------------------------------------------------------------------
# Fused statistics kernel: 4 GRUCells (gate-major, 128-lane aligned gates) + 4
# two-layer r_* MLPs (block-diagonal 2nd layer).  One read of Y / H; h replicated
# in-kernel (no h4 HBM stream).
# ----------------------------------------------------------------------------
def _stats_kernel(y_ref, h_ref, wih_ref, whh_ref, bih_ref, bhh_ref,
                  w1_ref, b1_ref, w2_ref, b2_ref, gru_ref, r_ref, *, C, H2):
    y32 = y_ref[...]
    h32 = h_ref[...]
    y = y32.astype(jnp.bfloat16)
    h = h32.astype(jnp.bfloat16)
    gi = jnp.dot(y, wih_ref[...], preferred_element_type=jnp.float32) + bih_ref[...]
    gh = jnp.dot(h, whh_ref[...], preferred_element_type=jnp.float32) + bhh_ref[...]
    r = jax.nn.sigmoid(gi[:, 0:C] + gh[:, 0:C])
    z = jax.nn.sigmoid(gi[:, C:2 * C] + gh[:, C:2 * C])
    n = jnp.tanh(gi[:, 2 * C:3 * C] + r * gh[:, 2 * C:3 * C])
    hrep = jnp.concatenate([h32] * (C // H2), axis=1)          # in-kernel replication
    gru_ref[...] = (1.0 - z) * n + z * hrep
    # r_* heads: Linear -> tanh -> block-diagonal Linear
    t = jnp.tanh(jnp.dot(y, w1_ref[...], preferred_element_type=jnp.float32) + b1_ref[...])
    r_ref[...] = jnp.dot(t.astype(w2_ref.dtype), w2_ref[...],
                         preferred_element_type=jnp.float32) + b2_ref[...]


def fused_stats_pallas(y, h, gru_wih, gru_whh, gru_bih, gru_bhh,
                       r_w1, r_b1, r_w2, r_b2):
    N, Ydim = y.shape
    H2 = h.shape[1]
    C = gru_wih.shape[1] // 3            # = 4 * H2 (4 fused GRU cells)
    tm = _row_tile(N)
    Npad = _round_up(N, tm)
    if Npad != N:
        y = jnp.pad(y, ((0, Npad - N), (0, 0)))
        h = jnp.pad(h, ((0, Npad - N), (0, 0)))

    gru_out, r_out = pl.pallas_call(
        functools.partial(_stats_kernel, C=C, H2=H2),
        out_shape=(jax.ShapeDtypeStruct((Npad, C), jnp.float32),
                   jax.ShapeDtypeStruct((Npad, C), jnp.float32)),
        grid=(Npad // tm,),
        in_specs=[pl.BlockSpec((tm, Ydim), lambda i: (i, 0)),
                  pl.BlockSpec((tm, H2), lambda i: (i, 0)),
                  pl.BlockSpec((Ydim, 3 * C), lambda i: (0, 0)),
                  pl.BlockSpec((H2, 3 * C), lambda i: (0, 0)),
                  pl.BlockSpec((1, 3 * C), lambda i: (0, 0)),
                  pl.BlockSpec((1, 3 * C), lambda i: (0, 0)),
                  pl.BlockSpec((Ydim, C), lambda i: (0, 0)),
                  pl.BlockSpec((1, C), lambda i: (0, 0)),
                  pl.BlockSpec((C, C), lambda i: (0, 0)),
                  pl.BlockSpec((1, C), lambda i: (0, 0))],
        out_specs=(pl.BlockSpec((tm, C), lambda i: (i, 0)),
                   pl.BlockSpec((tm, C), lambda i: (i, 0))),
        compiler_params=pltpu.CompilerParams(
            dimension_semantics=("parallel",),
            vmem_limit_bytes=_VMEM_LIMIT),
    )(y, h,
      gru_wih.astype(jnp.bfloat16), gru_whh.astype(jnp.bfloat16),
      gru_bih.reshape(1, -1).astype(jnp.float32),
      gru_bhh.reshape(1, -1).astype(jnp.float32),
      r_w1.astype(jnp.bfloat16), r_b1.reshape(1, -1).astype(jnp.float32),
      r_w2.astype(jnp.bfloat16), r_b2.reshape(1, -1).astype(jnp.float32))
    if Npad != N:
        gru_out, r_out = gru_out[:N], r_out[:N]
    return gru_out, r_out


# ----------------------------------------------------------------------------
# Fused masked Gaussian KL (rc & ner stacked along the row axis), column-tiled
# with an in-kernel accumulator (bounds VMEM on v7x, pipelines HBM reads).
# ----------------------------------------------------------------------------
def _kl_kernel(m1_ref, c1_ref, m2_ref, c2_ref, mask_ref, vl_ref, o_ref):
    k = pl.program_id(0)

    @pl.when(k == 0)
    def _():
        o_ref[...] = -0.5 * vl_ref[...]

    c1 = c1_ref[...]
    c2 = c2_ref[...]
    msk = mask_ref[...]
    c2i = 1.0 / c2
    md = m2_ref[...] - m1_ref[...]
    term = (jnp.log(c2) - jnp.log(c1) + c2i * c1 + md * c2i * md) * msk
    o_ref[...] += 0.5 * jnp.sum(term, axis=1, keepdims=True)


def kl_div_pallas(mean1, cov1, mean2, cov2, mask_kl, var_len):
    R, N = mean1.shape
    tc = _kl_col_tile(N)
    return pl.pallas_call(
        _kl_kernel,
        out_shape=jax.ShapeDtypeStruct((R, 1), jnp.float32),
        grid=(N // tc,),
        in_specs=[pl.BlockSpec((R, tc), lambda k: (0, k))] * 5
        + [pl.BlockSpec((R, 1), lambda k: (0, 0))],
        out_specs=pl.BlockSpec((R, 1), lambda k: (0, 0)),
        compiler_params=pltpu.CompilerParams(
            dimension_semantics=("arbitrary",),
            vmem_limit_bytes=_VMEM_LIMIT),
    )(mean1, cov1, mean2, cov2, mask_kl, var_len)


# ----------------------------------------------------------------------------
# BiLSTM: fused lane-dense input projection (Pallas matmul) + one Pallas kernel
# running the time recurrence with VMEM-resident state.  grid=(2,) "parallel":
# one direction per grid step (two TensorCores on v7x run the directions in parallel).
# ----------------------------------------------------------------------------
def _bilstm_scan_kernel(xp_ref, mask_ref, whh_ref, out_ref, h, c, *, hd, S):
    h[...] = jnp.zeros_like(h)
    c[...] = jnp.zeros_like(c)
    fwd = pl.program_id(0) == 0
    whh = whh_ref[...]                                         # (hd, 4*hd) f32

    def body(t, carry):
        tt = jnp.where(fwd, t, S - 1 - t)
        m = mask_ref[tt]                                       # (B, hd) pre-broadcast mask
        # TODO(synk): gate slices are not 128-lane aligned at hd=16; pad per-gate to 128
        #             if rnn_hidden is scaled up.
        g = xp_ref[tt] + jnp.dot(h[...], whh, preferred_element_type=jnp.float32)
        i = jax.nn.sigmoid(g[:, 0 * hd:1 * hd])
        f = jax.nn.sigmoid(g[:, 1 * hd:2 * hd])
        gg = jnp.tanh(g[:, 2 * hd:3 * hd])
        o = jax.nn.sigmoid(g[:, 3 * hd:4 * hd])
        c_new = f * c[...] + i * gg
        h_new = o * jnp.tanh(c_new)
        h[...] = m * h_new + (1.0 - m) * h[...]
        c[...] = m * c_new + (1.0 - m) * c[...]
        out_ref[tt] = m * h_new                                # pad_packed_sequence zero-pads
        return carry

    jax.lax.fori_loop(0, S, body, 0)


def bilstm_pallas(params, x, mask_s):
    """x: (B, S, Din) f32 -> (B, S, 2*hd) with packed-sequence (zero-padded) semantics."""
    B, S, Din = x.shape
    hd = params["lstm_whh_f"].shape[0]

    # fused input projection for both directions: one lane-dense (8*hd=128) Pallas matmul
    wih_all = jnp.concatenate([params["lstm_wih_f"], params["lstm_wih_b"]], axis=1)
    b_all = jnp.concatenate([params["lstm_bih_f"] + params["lstm_bhh_f"],
                             params["lstm_bih_b"] + params["lstm_bhh_b"]], axis=0)
    xp = linear_pallas(x.reshape(B * S, Din), wih_all, b_all)       # (B*S, 8*hd) f32
    xp = xp.reshape(B, S, 8 * hd).transpose(1, 0, 2)                # time-major (S, B, 8*hd)
    xp2 = jnp.stack([xp[:, :, :4 * hd], xp[:, :, 4 * hd:]], axis=0)  # (2, S, B, 4*hd)
    whh2 = jnp.stack([params["lstm_whh_f"], params["lstm_whh_b"]], axis=0)
    mask_b = jnp.broadcast_to(mask_s.T[:, :, None], (S, B, hd)).astype(jnp.float32)

    # TODO(synk): the recurrence is inherently sequential per direction; it runs as one
    #             VMEM-resident kernel (no per-step launches / HBM round-trips for h, c).
    out = pl.pallas_call(
        functools.partial(_bilstm_scan_kernel, hd=hd, S=S),
        out_shape=jax.ShapeDtypeStruct((2, S, B, hd), jnp.float32),
        grid=(2,),
        in_specs=[pl.BlockSpec((None, S, B, 4 * hd), lambda d: (d, 0, 0, 0)),
                  pl.BlockSpec((S, B, hd), lambda d: (0, 0, 0)),
                  pl.BlockSpec((None, hd, 4 * hd), lambda d: (d, 0, 0))],
        out_specs=pl.BlockSpec((None, S, B, hd), lambda d: (d, 0, 0, 0)),
        scratch_shapes=[pltpu.VMEM((B, hd), jnp.float32)] * 2,
        compiler_params=pltpu.CompilerParams(
            dimension_semantics=("parallel",),
            vmem_limit_bytes=_VMEM_LIMIT),
    )(xp2, mask_b, whh2)

    return jnp.concatenate([out[0], out[1]], axis=2).transpose(1, 0, 2)   # (B, S, 2*hd)


# ----------------------------------------------------------------------------
# Parameter fusion helpers (pure XLA, done at the wrapper level)
# ----------------------------------------------------------------------------
def _fuse_gru_params(params, names, H2):
    """Concatenate 4 GRUCells gate-major: columns [r(c0..c3) | z(c0..c3) | n(c0..c3)]."""
    def gate_major(mats):
        return jnp.concatenate(
            [jnp.concatenate([m[..., g * H2:(g + 1) * H2] for m in mats], axis=-1)
             for g in range(3)], axis=-1)
    wih = gate_major([params[n][0] for n in names])
    whh = gate_major([params[n][1] for n in names])
    bih = gate_major([params[n][2][None, :] for n in names])[0]
    bhh = gate_major([params[n][3][None, :] for n in names])[0]
    return wih, whh, bih, bhh


def _block_diag(mats):
    n = len(mats)
    rows = []
    for i, m in enumerate(mats):
        row = [m if j == i else jnp.zeros((m.shape[0], mats[j].shape[1]), m.dtype)
               for j in range(n)]
        rows.append(jnp.concatenate(row, axis=1))
    return jnp.concatenate(rows, axis=0)


def _fuse_r_params(params):
    order = ("r_rc_mean", "r_rc_std", "r_ner_mean", "r_ner_std")
    w1 = jnp.concatenate([params[o + "_w"] for o in order], axis=1)
    b1 = jnp.concatenate([params[o + "_b"] for o in order], axis=0)
    w2 = _block_diag([params[o + "2_w"] for o in order])
    b2 = jnp.concatenate([params[o + "2_b"] for o in order], axis=0)
    return w1, b1, w2, b2


# ----------------------------------------------------------------------------
# Parameters (deterministic synthetic init; shapes follow ToyNet.__init__)
# ----------------------------------------------------------------------------
def init_params(key, args):
    emb_dim, pos_dim, rnn_hidden = args["emb_dim"], args["pos_dim"], args["rnn_hidden"]
    in_dim = emb_dim + pos_dim
    H2 = 2 * rnn_hidden
    Ydim = N_BIO + N_LABEL
    keys = iter(jax.random.split(key, 64))

    def w(shape, scale=0.1):
        return jax.random.normal(next(keys), shape, dtype=jnp.float32) * scale

    p = {}
    # TODO(synk): pretrained embedding.npy / vocab.pkl loading replaced by random init.
    emb = w((args["vocab_size"], emb_dim), 0.5)
    p["emb"] = emb.at[PAD_ID].set(0.0)                    # padding_idx=PAD_ID
    p["pos_emb"] = w((args["n_pos"], pos_dim), 0.5)
    for sfx in ("f", "b"):
        p["lstm_wih_" + sfx] = w((in_dim, 4 * rnn_hidden))
        p["lstm_whh_" + sfx] = w((rnn_hidden, 4 * rnn_hidden))
        p["lstm_bih_" + sfx] = w((4 * rnn_hidden,))
        p["lstm_bhh_" + sfx] = w((4 * rnn_hidden,))
    for name in ("GRU_mean_rc", "GRU_std_rc", "GRU_mean_ner", "GRU_std_ner"):
        p[name] = (w((Ydim, 3 * H2)), w((H2, 3 * H2)), w((3 * H2,)), w((3 * H2,)))
    for pfx in ("r_rc", "r_ner"):
        p[pfx + "_mean_w"] = w((Ydim, H2)); p[pfx + "_mean_b"] = w((H2,))
        p[pfx + "_mean2_w"] = w((H2, H2)); p[pfx + "_mean2_b"] = w((H2,))
        p[pfx + "_std_w"] = w((Ydim, H2)); p[pfx + "_std_b"] = w((H2,))
        p[pfx + "_std2_w"] = w((H2, H2)); p[pfx + "_std2_b"] = w((H2,))
    for n in ("1", "2"):
        p["Lr" + n + "_w"] = w((2 * H2, H2)); p["Lr" + n + "_b"] = w((H2,))
        p["Cr" + n + "_w"] = w((H2, N_LABEL)); p["Cr" + n + "_b"] = w((N_LABEL,))
        p["Cg" + n + "_w"] = w((H2, N_BIO)); p["Cg" + n + "_b"] = w((N_BIO,))
    return p


# ----------------------------------------------------------------------------
# ToyNet.forward
# ----------------------------------------------------------------------------
def toynet_forward(params, args, tokens, pos, mask_s, num_sample=1, sample_key=None):
    B, S = tokens.shape
    rnn_hidden = args["rnn_hidden"]
    H2 = 2 * rnn_hidden

    tok_emb = jnp.take(params["emb"], tokens, axis=0)
    pos_embv = jnp.take(params["pos_emb"], pos, axis=0)
    rnn_inputs = jnp.concatenate([tok_emb, pos_embv], axis=2)
    real_len = jnp.sum(mask_s, axis=1).astype(jnp.int32)
    # TODO(synk): nn.Dropout(args.input_dropout) is stochastic in training; modeled as identity (p=0).

    H = bilstm_pallas(params, rnn_inputs, mask_s)                 # (B, S, 2h)

    # ---- first pass: fused pairwise relation (mask + max-over-j in-kernel) + Cg1 head ----
    logits_Cr1_full, prob_Cr, logits_Cg = pairwise_relation_pallas(
        H, real_len, params["Lr1_w"], params["Lr1_b"], params["Cr1_w"], params["Cr1_b"],
        cg_w=params["Cg1_w"], cg_b=params["Cg1_b"], with_max=True)
    prob_Cg = jax.nn.softmax(logits_Cg, axis=2)
    logits_Cg1 = jax.nn.log_softmax(logits_Cg, axis=2) * mask_s[:, :, None]
    # logits_Cr1_full: masked sigmoid probabilities (as in the reference)
    # prob_Cr: max over j of where(mask==0, -1e11, masked prob)   (B, S, L)

    Y = jnp.concatenate([prob_Cr, prob_Cg], axis=2)               # (B,S,L+bio)
    Ydim = Y.shape[2]
    Y2 = Y.reshape(B * S, Ydim)
    H2d = H.reshape(B * S, H2)

    # ---- fused statistics (4 GRUCells + 4 two-layer r_* MLPs in one kernel) ----
    gru_names = ("GRU_mean_rc", "GRU_std_rc", "GRU_mean_ner", "GRU_std_ner")
    g_wih, g_whh, g_bih, g_bhh = _fuse_gru_params(params, gru_names, H2)
    r_w1, r_b1, r_w2, r_b2 = _fuse_r_params(params)
    gru_out, r_out = fused_stats_pallas(Y2, H2d, g_wih, g_whh, g_bih, g_bhh,
                                        r_w1, r_b1, r_w2, r_b2)

    mean_rc = gru_out[:, 0 * H2:1 * H2].reshape(B, S, H2)
    std_rc = gru_out[:, 1 * H2:2 * H2].reshape(B, S, H2)
    mean_ner = gru_out[:, 2 * H2:3 * H2].reshape(B, S, H2)
    std_ner = gru_out[:, 3 * H2:4 * H2].reshape(B, S, H2)
    cov_rc = std_rc * std_rc + SMALL
    cov_ner = std_ner * std_ner + SMALL

    mean_r_rc = r_out[:, 0 * H2:1 * H2].reshape(B, S, H2)
    std_r_rc = r_out[:, 1 * H2:2 * H2].reshape(B, S, H2)
    mean_r_ner = r_out[:, 2 * H2:3 * H2].reshape(B, S, H2)
    std_r_ner = r_out[:, 3 * H2:4 * H2].reshape(B, S, H2)
    cov_r_rc = std_r_rc * std_r_rc + SMALL
    cov_r_ner = std_r_ner * std_r_ner + SMALL

    # get_sample_from_param_batch (torch.randn -> jax.random with a fixed key)
    k1, k2 = jax.random.split(sample_key)

    def sample(mean, cov, k):
        z = jax.random.normal(k, (B, num_sample, S, H2), dtype=jnp.float32)
        return z * jnp.sqrt(cov)[:, None] + mean[:, None]

    encoding_rc = sample(mean_rc, cov_rc, k1)
    encoding_ner = sample(mean_ner, cov_ner, k2)

    # ---- second pass (on sampled encodings): pairwise + fused Cg2 head, masked in-kernel ----
    enc_rc = encoding_rc.reshape(B * num_sample, S, H2)
    enc_ner = encoding_ner.reshape(B * num_sample, S, H2)
    rlen2 = jnp.repeat(real_len, num_sample)
    logits_Cr2_full, logits_Cg_2 = pairwise_relation_pallas(
        enc_rc, rlen2, params["Lr2_w"], params["Lr2_b"], params["Cr2_w"], params["Cr2_b"],
        cg_w=params["Cg2_w"], cg_b=params["Cg2_b"], cg_h=enc_ner, with_max=False)
    logits_Cg_2 = logits_Cg_2.reshape(B, num_sample, S, N_BIO)
    logits_Cg2 = jax.nn.log_softmax(logits_Cg_2, axis=3) * mask_s[:, None, :, None]
    logits_Cr2 = logits_Cr2_full.reshape(B, num_sample, S, S, N_LABEL)   # already masked

    # ---- KL terms (rc & ner fused into one column-tiled reduction kernel) ----
    # NOTE: the reference builds mask_kl with K repeats; it assumes args['K'] == 2*rnn_hidden.
    K = args["K"]
    mask_kl = jnp.repeat(mask_s[:, :, None], K, axis=2).reshape(B, -1)
    var_len = (H2 * real_len).astype(jnp.float32).reshape(B, 1)
    m1 = jnp.concatenate([mean_rc.reshape(B, -1), mean_ner.reshape(B, -1)], axis=0)
    c1 = jnp.concatenate([cov_rc.reshape(B, -1), cov_ner.reshape(B, -1)], axis=0)
    m2 = jnp.concatenate([mean_r_rc.reshape(B, -1), mean_r_ner.reshape(B, -1)], axis=0)
    c2 = jnp.concatenate([cov_r_rc.reshape(B, -1), cov_r_ner.reshape(B, -1)], axis=0)
    kl = kl_div_pallas(m1, c1, m2, c2,
                       jnp.tile(mask_kl, (2, 1)), jnp.tile(var_len, (2, 1)))[:, 0]
    kl_rc, kl_ner = kl[:B], kl[B:]
    loss = args["beta1"] * jnp.mean(kl_rc) + args["beta2"] * jnp.mean(kl_ner)

    return (loss,
            logits_Cg1.reshape(-1, N_BIO),
            logits_Cr1_full.reshape(-1, N_LABEL),
            logits_Cg2.reshape(-1, N_BIO),
            logits_Cr2.reshape(-1, N_LABEL))


# ----------------------------------------------------------------------------
if __name__ == "__main__":
    args = dict(emb_dim=24, pos_dim=8, rnn_hidden=16, max_sent_len=8,
                K=32, beta1=1e-3, beta2=1e-3, vocab_size=50, n_pos=10,
                input_dropout=0.0)
    B, S = 2, 8

    key = jax.random.PRNGKey(0)
    k_param, k_tok, k_pos, k_sample = jax.random.split(key, 4)
    params = init_params(k_param, args)

    # sequence lengths sorted descending (pack_padded_sequence requirement)
    lens = jnp.array([8, 6], dtype=jnp.int32)
    pos_idx = jnp.arange(S)
    mask_s = (pos_idx[None, :] < lens[:, None]).astype(jnp.float32)          # (B,S)
    tokens = jax.random.randint(k_tok, (B, S), 1, args["vocab_size"])
    tokens = jnp.where(mask_s > 0, tokens, PAD_ID).astype(jnp.int32)
    pos = jax.random.randint(k_pos, (B, S), 0, args["n_pos"]).astype(jnp.int32)

    outs = toynet_forward(params, args, tokens, pos, mask_s,
                          num_sample=1, sample_key=k_sample)
    outs = jax.block_until_ready(outs)

    assert outs[0].shape == ()
    assert outs[1].shape == (B * S, N_BIO)
    assert outs[2].shape == (B * S * S, N_LABEL)
    assert outs[3].shape == (B * 1 * S, N_BIO)
    assert outs[4].shape == (B * 1 * S * S, N_LABEL)
    assert all(bool(jnp.all(jnp.isfinite(o))) for o in outs)

    print("KERNEL_OK")
</pallas_src>

<mosaic_0001>
module attributes {stable_mosaic.version = 11 : i64} {
  func.func @_linear_kernel(%arg0: i32, %arg1: memref<16x32xf32, #tpu.memory_space<vmem>>, %arg2: memref<32x128xbf16, #tpu.memory_space<vmem>>, %arg3: memref<1x128xf32, #tpu.memory_space<vmem>>, %arg4: memref<16x128xf32, #tpu.memory_space<vmem>>) attributes {dimension_semantics = [#tpu.dimension_semantics<parallel>], iteration_bounds = array<i64: 1>, scalar_prefetch = 0 : i64, scratch_operands = 0 : i64, tpu.core_type = #tpu.core_type<tc>, window_params = [{transform_indices = @transform_0, window_bounds = array<i64: 16, 32>}, {pipeline_mode = #tpu.pipeline_mode<synchronous>, transform_indices = @transform_1, window_bounds = array<i64: 32, 128>}, {pipeline_mode = #tpu.pipeline_mode<synchronous>, transform_indices = @transform_2, window_bounds = array<i64: 1, 128>}, {transform_indices = @transform_3, window_bounds = array<i64: 16, 128>}]} {
    %c0 = arith.constant 0 : index
    %c0_0 = arith.constant 0 : index
    %0 = vector.load %arg1[%c0, %c0_0] : memref<16x32xf32, #tpu.memory_space<vmem>>, vector<16x32xf32>
    %1 = arith.truncf %0 : vector<16x32xf32> to vector<16x32xbf16>
    %c0_1 = arith.constant 0 : index
    %c0_2 = arith.constant 0 : index
    %2 = vector.load %arg2[%c0_1, %c0_2] : memref<32x128xbf16, #tpu.memory_space<vmem>>, vector<32x128xbf16>
    %cst = arith.constant dense<0.000000e+00> : vector<16x128xf32>
    %3 = tpu.matmul %1, %2, %cst {dimension_numbers = #tpu.dot_dimension_numbers<[1], [0], [0], [1], [0, 0, 1, 1], [], []>} : vector<16x32xbf16>, vector<32x128xbf16>, vector<16x128xf32> -> vector<16x128xf32>
    %c0_3 = arith.constant 0 : index
    %c0_4 = arith.constant 0 : index
    %4 = vector.load %arg3[%c0_3, %c0_4] : memref<1x128xf32, #tpu.memory_space<vmem>>, vector<1x128xf32>
    %5 = vector.broadcast %4 : vector<1x128xf32> to vector<16x128xf32>
    %6 = arith.addf %3, %5 : vector<16x128xf32>
    %c0_5 = arith.constant 0 : index
    %c0_6 = arith.constant 0 : index
    %7 = vector.load %arg4[%c0_5, %c0_6] : memref<16x128xf32, #tpu.memory_space<vmem>>, vector<16x128xf32>
    tpu.vector_store %arg4[%c0_5, %c0_6], %6 {strides = array<i32>} : memref<16x128xf32, #tpu.memory_space<vmem>>, vector<16x128xf32>,
    return
  }
  func.func @transform_0(%arg0: i32) -> (i32, i32) {
    %c0_i32 = arith.constant 0 : i32
    %c0_i32_0 = arith.constant 0 : i32
    return %arg0, %c0_i32 : i32, i32
  }
  func.func @transform_1(%arg0: i32) -> (i32, i32) {
    %c0_i32 = arith.constant 0 : i32
    %c0_i32_0 = arith.constant 0 : i32
    %c0_i32_1 = arith.constant 0 : i32
    return %c0_i32, %c0_i32_0 : i32, i32
  }
  func.func @transform_2(%arg0: i32) -> (i32, i32) {
    %c0_i32 = arith.constant 0 : i32
    %c0_i32_0 = arith.constant 0 : i32
    %c0_i32_1 = arith.constant 0 : i32
    return %c0_i32, %c0_i32_0 : i32, i32
  }
  func.func @transform_3(%arg0: i32) -> (i32, i32) {
    %c0_i32 = arith.constant 0 : i32
    %c0_i32_0 = arith.constant 0 : i32
    return %arg0, %c0_i32 : i32, i32
  }
}

</mosaic_0001>

<bundles_post_ra>
// kernel: tpu_custom_call.1
= control target key start
LH: loop header
LB: loop body
LE: loop exit
PB: predicated region body
PF: predicated region fallthrough
CT: control target
= control target key end

     0   :  { %8 = vsyncpa [#allocation3], 0  ;;  %s307_s0 = inlined_call_operand.hbm [shape: f32[16,32], index: 0, kind: input, shape index: {}]   ;;  %s308_s1 = inlined_call_operand.hbm [shape: bf16[32,128], index: 1, kind: input, shape index: {}]   ;;  %s309_s2 = inlined_call_operand.vmem [shape: f32[1,128], index: 2, kind: input, shape index: {}]   ;;  %s310_s3 = inlined_call_operand.hbm [shape: f32[16,128], index: 3, kind: output, shape index: {}]  }
   0x1   :  { %9 = vsyncpa [#allocation6], 0 }
   0x2   :  { %10 = vsyncpa [#allocation4], 0  ;;  %s233_s12 = smov [#allocation2]   ;;  %s161_s16 = scalar_lea.hbm %s307_s0, 256 }
   0x3   :  { %s16_s13 = sshll.u32 %s233_s12, 4  ;;  %p162_p0 = scmp.ne.s32.totalorder %s307_s0, %s161_s16  ;;  %s17_s13 = int_to_ptr.vmem [resolvable:$true] %s16_s13 }
   0x4   :  { %p165_p1 = scmp.lt.u32.totalorder %s161_s16, %s307_s0 }
   0x6   :  { %p167_p2 = pnand %p165_p1, %p162_p0 }
   0x8   :  { %170 = shalt.err (!%p167_p2)
}
   0x9   :  { %s171_s21 = scalar_lea.vmem %s17_s13, 256  ;;  %p176_p4 = scmp.lt.s32.totalorder %s17_s13, %s17_s13 }
   0xa   :  { %p172_p3 = scmp.ne.s32.totalorder %s17_s13, %s171_s21  ;;  %p177_p5 = scmp.lt.s32.totalorder %s171_s21, %s171_s21 }
   0xc   :  { %p178_p6 = por %p177_p5, %p176_p4 }
   0xe   :  { %p179_p7 = pnand %p178_p6, %p172_p3 }
  0x10   :  { %182 = shalt.err (!%p179_p7)
}
  0x11   :  { %s234_s22 = smov 128   ;;  %s235_s23 = smov 8  }
  0x12   :  { %22 = dma.hbm_to_vmem [thread:$0]  %s307_s0, 256, %s17_s13, [#allocation3], %s234_s22, %s234_s22, %s235_s23  }
  0x13   :  { %s236_s26 = smov [#allocation5]   ;;  %s183_s30 = scalar_lea.hbm %s308_s1, 256 }
  0x14   :  { %s28_s27 = sshll.u32 %s236_s26, 4  ;;  %p184_p8 = scmp.ne.s32.totalorder %s308_s1, %s183_s30  ;;  %s29_s27 = int_to_ptr.vmem [resolvable:$true] %s28_s27 }
  0x15   :  { %p187_p9 = scmp.lt.u32.totalorder %s183_s30, %s308_s1 }
  0x17   :  { %p189_p10 = pnand %p187_p9, %p184_p8 }
  0x19   :  { %192 = shalt.err (!%p189_p10)
}
  0x1a   :  { %s193_s8 = scalar_lea.vmem %s29_s27, 256  ;;  %p198_p12 = scmp.lt.s32.totalorder %s29_s27, %s29_s27 }
  0x1b   :  { %p194_p11 = scmp.ne.s32.totalorder %s29_s27, %s193_s8  ;;  %p199_p13 = scmp.lt.s32.totalorder %s193_s8, %s193_s8 }
  0x1d   :  { %p200_p0 = por %p199_p13, %p198_p12 }
  0x1f   :  { %p201_p1 = pnand %p200_p0, %p194_p11 }
  0x21   :  { %204 = shalt.err (!%p201_p1)
}
  0x22   :  { %s237_s0 = smov 64   ;;  %s238_s9 = smov 4  }
  0x23   :  { %34 = dma.hbm_to_vmem [thread:$0]  %s308_s1, 256, %s29_s27, [#allocation6], %s237_s0, %s237_s0, %s238_s9  }
  0x24   :  { %227 = dma.done.wait [#allocation3], 256  }
  0x25   :  { %228 = vsyncadd [#allocation3], 4294967040 }
  0x26   :  { %229 = dma.done.wait [#allocation6], 256  }
  0x27   :  { %230 = vsyncadd [#allocation6], 4294967040  ;;  %v239_v0 = vmov 0.0   ;;  %vm240_vm0 = vmmov 0   ;;  %v159_v1 = vld [vmem:[#allocation5] sm:$0xff]   ;;  %v160_v2 = vld [vmem:[#allocation5 + $0x8] sm:$0xff]  }
  0x28   :  { %142 = vmatprep.subr.bf16.mxu0 %v239_v0  ;;  %146 = vmatprep.mubr.msk.bf16.mxu0 %vm240_vm0, %v239_v0  ;;  %v44_v3 = vld [vmem:[#allocation2] sm:$0xff]  ;;  %v45_v4 = vld [vmem:[#allocation2 + $0x8] sm:$0xff]  ;;  %vm70_vm1 = vcmask 261120   ;;  %s241_s13 = smov [#allocation7]  }
  0x29   :  { %143 = vmatpush3.bf16.msra.mxu0 %v159_v1  ;;  %v46_v5 = vpack.c.bf16 %v45_v4, %v44_v3  ;;  %v135_v6 = vld [vmem:[%s309_s2] ss:$0 sm:$0xff]  ;;  %s122_s14 = sshll.u32 %s241_s13, 4  ;;  %s123_s14 = int_to_ptr.vmem [resolvable:$true] %s122_s14 }
  0x2a   :  { %144 = vmatprep.subr.bf16.mxu0 %v239_v0  ;;  %s205_s15 = scalar_lea.vmem %s123_s14, 256  ;;  %p210_p3 = scmp.lt.s32.totalorder %s123_s14, %s123_s14 }
  0x2b   :  { %p206_p2 = scmp.ne.s32.totalorder %s123_s14, %s205_s15  ;;  %p211_p4 = scmp.lt.s32.totalorder %s205_s15, %s205_s15 }
  0x2d   :  { %145 = vmatpush3.bf16.msra.mxu0 %v160_v2  ;;  %p212_p5 = por %p211_p4, %p210_p3 }
  0x2f   :  { %p213_p6 = pnand %p212_p5, %p206_p2 }
  0x30   :  { %147 = vmatmul.mubr.msk.bf16.vlgmr.msra.gmra.mrb[0].mxu0 %vm70_vm1, %v46_v5 }
 0x103   :  { %v108_v7 = vpop.f32.mrb[0].mxu0 }
 0x104   :  { %v109_v8 = vadd.f32 %v135_v6, %v108_v7  ;;  %v148_v9 = vpop.f32.mrb[1].mxu0 }
 0x105   :  { %v111_v10 = vpop.f32.mrb[2].mxu0 }
 0x106   :  { %115 = vst [vmem:[#allocation7] sm:$0xff] %v109_v8  ;;  %v112_v11 = vadd.f32 %v135_v6, %v111_v10  ;;  %v149_v12 = vpop.f32.mrb[3].mxu0 }
 0x108   :  { %116 = vst [vmem:[#allocation7 + $0x8] sm:$0xff] %v112_v11 }
 0x109   :  { %216 = shalt.err (!%p213_p6)
}
 0x10a   :  { %s217_s17 = scalar_lea.hbm %s310_s3, 256 }
 0x10b   :  { %p218_p7 = scmp.ne.s32.totalorder %s310_s3, %s217_s17  ;;  %p221_p8 = scmp.lt.u32.totalorder %s217_s17, %s310_s3 }
 0x10d   :  { %p223_p9 = pnand %p221_p8, %p218_p7 }
 0x10f   :  { %226 = shalt.err (!%p223_p9)
}
 0x110   :  { %128 = dma.vmem_to_hbm [thread:$0]  %s123_s14, 256, %s310_s3, [#allocation4], %s234_s22, %s234_s22, %s235_s23  }
 0x111   :  { %231 = dma.done.wait [#allocation4], 256  }
 0x112   :  { %232 = vsyncadd [#allocation4], 4294967040 }
 0x113   :  { %132 = vsyncpa [#allocation3], 1 }
 0x114   :  { %133 = vsyncpa [#allocation6], 1 }
 0x115   :  { %134 = vsyncpa [#allocation4], 1 }

</bundles_post_ra>
